<compile_context>
chip_gen: v7x
topology: tpu7x:2x2x1
jax: 0.10.0
libtpu: 0.0.40
codegen_flags: <defaults>
</compile_context>

<pallas_src>
import jax
import jax.numpy as jnp
from jax.experimental import pallas as pl
from jax.experimental.pallas import tpu as pltpu


LANE = 128


def _round_up(v, m):
    return ((v + m - 1) // m) * m


# ----------------------------------------------------------------------------
# Pass 1: fused feature transform, row-tiled.
#   t = x @ W_comb + b_comb          (one MXU matmul per row tile)
# Output stored in bf16 so pass 2 feeds the MXU native bf16 operands.
# ----------------------------------------------------------------------------
def transform_kernel(x_ref, w_ref, b_ref, t_ref):
    t = jnp.dot(x_ref[...], w_ref[...], preferred_element_type=jnp.float32)
    t_ref[...] = (t + b_ref[...]).astype(t_ref.dtype)


# ----------------------------------------------------------------------------
# Pass 2: message passing + bias + relu.
#   out[i] = relu( sum_k adj[i, k] @ t[k] + bg )
# Grid = (destination-row tiles, source-column tiles); the reduction axis is
# last.  Accumulates directly into the VMEM-resident output block.
# ----------------------------------------------------------------------------
def propagate_kernel(adj_ref, t_ref, bg_ref, out_ref):
    k = pl.program_id(1)

    @pl.when(k == 0)
    def _():
        out_ref[...] = jnp.zeros_like(out_ref)

    out_ref[...] += jnp.dot(adj_ref[...], t_ref[...],
                            preferred_element_type=jnp.float32)

    @pl.when(k == pl.num_programs(1) - 1)
    def _():
        out_ref[...] = jnp.maximum(out_ref[...] + bg_ref[...], 0.0)


# ----------------------------------------------------------------------------
# Glue: one-time param packing (block-diag fusion + stage folding + lane pad)
# and cached adjacency.
# ----------------------------------------------------------------------------
def pack_cell_params(params):
    his, hidden = params["w0"].shape
    cur = params["w1"].shape[0]
    two_h = 2 * hidden

    # Block-diagonal fusion of preprocess0/preprocess1 and the two GCN weights.
    w_pre = jnp.zeros((his + cur, two_h), jnp.float32)
    w_pre = w_pre.at[:his, :hidden].set(params["w0"])
    w_pre = w_pre.at[his:, hidden:].set(params["w1"])
    b_pre = jnp.concatenate([params["b0"], params["b1"]], axis=1)

    wg = jnp.zeros((two_h, two_h), jnp.float32)
    wg = wg.at[:hidden, :hidden].set(params["wg0"])
    wg = wg.at[hidden:, hidden:].set(params["wg1"])
    bg = jnp.concatenate([params["bg0"], params["bg1"]], axis=1)

    # Fold the two dense stages: (x @ W_pre + b_pre) @ Wg = x @ W_comb + b_comb.
    w_comb = w_pre @ wg
    b_comb = b_pre @ wg

    # Lane-dense output: pad 2H up to a multiple of 128. Padded columns stay
    # zero everywhere (zero weight/bias columns -> zero t -> zero out) and are
    # sliced off after the call.
    two_h_pad = max(_round_up(two_h, LANE), LANE)
    pad = two_h_pad - two_h
    if pad:
        w_comb = jnp.pad(w_comb, ((0, 0), (0, pad)))
        b_comb = jnp.pad(b_comb, ((0, 0), (0, pad)))
        bg = jnp.pad(bg, ((0, 0), (0, pad)))
    return w_comb, b_comb, bg, two_h


def build_gcn_adj(edge_index, num_nodes):
    # PyG GCNConv normalization: D^{-1/2} (A + I) D^{-1/2}, scatter-ADD weights.
    src, dst = edge_index[0], edge_index[1]
    a = jnp.zeros((num_nodes, num_nodes), jnp.float32)
    a = a.at[dst, src].add(1.0)                       # message src -> dst
    a = a + jnp.eye(num_nodes, dtype=jnp.float32)     # self loops
    deg = a.sum(axis=1)
    dinv = jnp.where(deg > 0, 1.0 / jnp.sqrt(deg), 0.0)
    return dinv[:, None] * a * dinv[None, :]


def cell_forward(s0, s1, edge_index, edge_attr, drop_prob, packed_params,
                 adj=None, *, tile_n=1024):
    # edge_attr: unused by the plain-GCN op choice (PyTorch `else` branch).
    # drop_prob: unused in the PyTorch forward as written.
    del edge_attr, drop_prob
    w_comb, b_comb, bg, two_h = packed_params
    n = s0.shape[0]
    two_h_pad = w_comb.shape[1]

    if adj is None:                         # prefer passing a cached adj
        adj = build_gcn_adj(edge_index, n)

    x = jnp.concatenate([s0, s1], axis=1).astype(jnp.float32)

    # Row/source tiling; pad N to a multiple of tile_n (multiple of 128) when
    # tiling is actually needed. Padded rows/cols are zero in adj -> harmless.
    if n <= tile_n:
        tile, n_pad = n, n
    else:
        tile = tile_n
        n_pad = ((n + tile - 1) // tile) * tile
        pad = n_pad - n
        x = jnp.pad(x, ((0, pad), (0, 0)))
        adj = jnp.pad(adj, ((0, pad), (0, pad)))

    # bf16 MXU operand for the dominant N^2 stream; f32 accumulation in-kernel.
    adj_bf16 = adj.astype(jnp.bfloat16)
    feat = x.shape[1]
    n_tiles = n_pad // tile
    # NOTE(v7x): with >1 row tile the "parallel" i-axis shards across both
    # TensorCores; the demo size degenerates to a (1, 1) grid.

    # Pass 1: t = x @ W_comb + b_comb  (row-tiled, computed once per source tile)
    t = pl.pallas_call(
        transform_kernel,
        out_shape=jax.ShapeDtypeStruct((n_pad, two_h_pad), jnp.bfloat16),
        grid_spec=pltpu.PrefetchScalarGridSpec(
            num_scalar_prefetch=0,
            grid=(n_tiles,),
            in_specs=[
                pl.BlockSpec((tile, feat), lambda i: (i, 0)),
                pl.BlockSpec(w_comb.shape, lambda i: (0, 0)),
                pl.BlockSpec(b_comb.shape, lambda i: (0, 0)),
            ],
            out_specs=pl.BlockSpec((tile, two_h_pad), lambda i: (i, 0)),
        ),
        compiler_params=pltpu.CompilerParams(
            dimension_semantics=("parallel",),
        ),
    )(x, w_comb, b_comb)

    # Pass 2: out = relu(adj @ t + bg)  (destination-row tiles x source tiles)
    out = pl.pallas_call(
        propagate_kernel,
        out_shape=jax.ShapeDtypeStruct((n_pad, two_h_pad), jnp.float32),
        grid_spec=pltpu.PrefetchScalarGridSpec(
            num_scalar_prefetch=0,
            grid=(n_tiles, n_tiles),
            in_specs=[
                pl.BlockSpec((tile, tile), lambda i, k: (i, k)),        # adj
                pl.BlockSpec((tile, two_h_pad), lambda i, k: (k, 0)),   # t
                pl.BlockSpec(bg.shape, lambda i, k: (0, 0)),            # bias
            ],
            out_specs=pl.BlockSpec((tile, two_h_pad), lambda i, k: (i, 0)),
        ),
        compiler_params=pltpu.CompilerParams(
            dimension_semantics=("parallel", "arbitrary"),
        ),
    )(adj_bf16, t, bg)

    return out[:n, :two_h]


# Pure-JAX reference (unpacked params, f32) for correctness checking.
def cell_ref(s0, s1, adj, p):
    h0 = s0 @ p["w0"] + p["b0"]
    h1 = s1 @ p["w1"] + p["b1"]
    s2 = adj @ (h0 @ p["wg0"]) + p["bg0"]
    s3 = adj @ (h1 @ p["wg1"]) + p["bg1"]
    return jnp.maximum(jnp.concatenate([s2, s3], axis=1), 0.0)


def init_linear(key, fan_in, fan_out):
    # PyTorch nn.Linear-style uniform init, stored as (in, out).
    kw, kb = jax.random.split(key)
    bound = 1.0 / jnp.sqrt(jnp.float32(fan_in))
    w = jax.random.uniform(kw, (fan_in, fan_out), jnp.float32, -bound, bound)
    b = jax.random.uniform(kb, (1, fan_out), jnp.float32, -bound, bound)
    return w, b


if __name__ == "__main__":
    key = jax.random.PRNGKey(0)
    N = 16                       # number of graph nodes
    his_dim, cur_dim = 16, 24
    hidden_dim = out_dim = 32    # Cell asserts hidden_dim == out_dim
    edge_dim = 8

    k_s0, k_s1, k_ea, k_p0, k_p1, k_g0, k_g1 = jax.random.split(key, 7)

    # Inputs
    s0 = jax.random.normal(k_s0, (N, his_dim), jnp.float32)
    s1 = jax.random.normal(k_s1, (N, cur_dim), jnp.float32)
    # Deterministic small graph: a ring plus a few chords.
    ring_src = jnp.arange(N, dtype=jnp.int32)
    ring_dst = (ring_src + 1) % N
    chord_src = jnp.arange(0, N, 4, dtype=jnp.int32)
    chord_dst = (chord_src + 5) % N
    edge_index = jnp.stack([jnp.concatenate([ring_src, chord_src]),
                            jnp.concatenate([ring_dst, chord_dst])])
    edge_attr = jax.random.normal(k_ea, (edge_index.shape[1], edge_dim),
                                  jnp.float32)
    drop_prob = 0.0

    # Parameters (deterministic init; shapes follow Cell.__init__)
    w0, b0 = init_linear(k_p0, his_dim, hidden_dim)     # preprocess0
    w1, b1 = init_linear(k_p1, cur_dim, hidden_dim)     # preprocess1
    wg0, bg0 = init_linear(k_g0, hidden_dim, out_dim)   # _gnn[0] (GCN)
    wg1, bg1 = init_linear(k_g1, hidden_dim, out_dim)   # _gnn[1] (GCN)
    params = dict(w0=w0, b0=b0, w1=w1, b1=b1,
                  wg0=wg0, bg0=bg0, wg1=wg1, bg1=bg1)

    # One-time packing + adjacency caching (hoisted out of the hot path).
    packed = pack_cell_params(params)
    adj = build_gcn_adj(edge_index, N)

    out = cell_forward(s0, s1, edge_index, edge_attr, drop_prob, packed,
                       adj=adj)
    out = jax.block_until_ready(out)

    # Correctness check vs pure-JAX f32 reference (tolerance loosened for the
    # bf16 adj/t MXU path).
    ref = cell_ref(s0, s1, adj, params)
    assert out.shape == (N, 2 * hidden_dim)
    assert jnp.allclose(out, ref, atol=3e-2, rtol=3e-2), "mismatch vs reference"

    print("KERNEL_OK")
</pallas_src>

<mosaic_0001>
module attributes {stable_mosaic.version = 11 : i64} {
  func.func @transform_kernel(%arg0: i32, %arg1: memref<16x40xf32, #tpu.memory_space<vmem>>, %arg2: memref<40x128xf32, #tpu.memory_space<vmem>>, %arg3: memref<1x128xf32, #tpu.memory_space<vmem>>, %arg4: memref<16x128xbf16, #tpu.memory_space<vmem>>) attributes {dimension_semantics = [#tpu.dimension_semantics<parallel>], iteration_bounds = array<i64: 1>, scalar_prefetch = 0 : i64, scratch_operands = 0 : i64, tpu.core_type = #tpu.core_type<tc>, window_params = [{transform_indices = @transform_0, window_bounds = array<i64: 16, 40>}, {pipeline_mode = #tpu.pipeline_mode<synchronous>, transform_indices = @transform_1, window_bounds = array<i64: 40, 128>}, {pipeline_mode = #tpu.pipeline_mode<synchronous>, transform_indices = @transform_2, window_bounds = array<i64: 1, 128>}, {transform_indices = @transform_3, window_bounds = array<i64: 16, 128>}]} {
    %c0 = arith.constant 0 : index
    %c0_0 = arith.constant 0 : index
    %0 = vector.load %arg1[%c0, %c0_0] : memref<16x40xf32, #tpu.memory_space<vmem>>, vector<16x40xf32>
    %c0_1 = arith.constant 0 : index
    %c0_2 = arith.constant 0 : index
    %1 = vector.load %arg2[%c0_1, %c0_2] : memref<40x128xf32, #tpu.memory_space<vmem>>, vector<40x128xf32>
    %cst = arith.constant dense<0.000000e+00> : vector<16x128xf32>
    %2 = tpu.matmul %0, %1, %cst {dimension_numbers = #tpu.dot_dimension_numbers<[1], [0], [0], [1], [0, 0, 1, 1], [], []>} : vector<16x40xf32>, vector<40x128xf32>, vector<16x128xf32> -> vector<16x128xf32>
    %c0_3 = arith.constant 0 : index
    %c0_4 = arith.constant 0 : index
    %3 = vector.load %arg3[%c0_3, %c0_4] : memref<1x128xf32, #tpu.memory_space<vmem>>, vector<1x128xf32>
    %4 = vector.broadcast %3 : vector<1x128xf32> to vector<16x128xf32>
    %5 = arith.addf %2, %4 : vector<16x128xf32>
    %6 = arith.truncf %5 : vector<16x128xf32> to vector<16x128xbf16>
    %c0_5 = arith.constant 0 : index
    %c0_6 = arith.constant 0 : index
    %7 = vector.load %arg4[%c0_5, %c0_6] : memref<16x128xbf16, #tpu.memory_space<vmem>>, vector<16x128xbf16>
    tpu.vector_store %arg4[%c0_5, %c0_6], %6 {strides = array<i32>} : memref<16x128xbf16, #tpu.memory_space<vmem>>, vector<16x128xbf16>,
    return
  }
  func.func @transform_0(%arg0: i32) -> (i32, i32) {
    %c0_i32 = arith.constant 0 : i32
    %c0_i32_0 = arith.constant 0 : i32
    return %arg0, %c0_i32 : i32, i32
  }
  func.func @transform_1(%arg0: i32) -> (i32, i32) {
    %c0_i32 = arith.constant 0 : i32
    %c0_i32_0 = arith.constant 0 : i32
    %c0_i32_1 = arith.constant 0 : i32
    return %c0_i32, %c0_i32_0 : i32, i32
  }
  func.func @transform_2(%arg0: i32) -> (i32, i32) {
    %c0_i32 = arith.constant 0 : i32
    %c0_i32_0 = arith.constant 0 : i32
    %c0_i32_1 = arith.constant 0 : i32
    return %c0_i32, %c0_i32_0 : i32, i32
  }
  func.func @transform_3(%arg0: i32) -> (i32, i32) {
    %c0_i32 = arith.constant 0 : i32
    %c0_i32_0 = arith.constant 0 : i32
    return %arg0, %c0_i32 : i32, i32
  }
}

</mosaic_0001>

<bundles_post_ra>
// kernel: tpu_custom_call.1
= control target key start
LH: loop header
LB: loop body
LE: loop exit
PB: predicated region body
PF: predicated region fallthrough
CT: control target
= control target key end

     0   :  { %8 = vsyncpa [#allocation3], 0  ;;  %s354_s0 = inlined_call_operand.hbm [shape: f32[16,40], index: 0, kind: input, shape index: {}]   ;;  %s355_s1 = inlined_call_operand.hbm [shape: f32[40,128], index: 1, kind: input, shape index: {}]   ;;  %s356_s2 = inlined_call_operand.vmem [shape: f32[1,128], index: 2, kind: input, shape index: {}]   ;;  %s357_s3 = inlined_call_operand.hbm [shape: bf16[16,128], index: 3, kind: output, shape index: {}]  }
   0x1   :  { %9 = vsyncpa [#allocation6], 0 }
   0x2   :  { %10 = vsyncpa [#allocation4], 0  ;;  %s286_s12 = smov [#allocation2]   ;;  %s214_s16 = scalar_lea.hbm %s354_s0, 256 }
   0x3   :  { %s16_s13 = sshll.u32 %s286_s12, 4  ;;  %p215_p0 = scmp.ne.s32.totalorder %s354_s0, %s214_s16  ;;  %s17_s13 = int_to_ptr.vmem [resolvable:$true] %s16_s13 }
   0x4   :  { %p218_p1 = scmp.lt.u32.totalorder %s214_s16, %s354_s0 }
   0x6   :  { %p220_p2 = pnand %p218_p1, %p215_p0 }
   0x8   :  { %223 = shalt.err (!%p220_p2)
}
   0x9   :  { %s224_s21 = scalar_lea.vmem %s17_s13, 256  ;;  %p229_p4 = scmp.lt.s32.totalorder %s17_s13, %s17_s13 }
   0xa   :  { %p225_p3 = scmp.ne.s32.totalorder %s17_s13, %s224_s21  ;;  %p230_p5 = scmp.lt.s32.totalorder %s224_s21, %s224_s21 }
   0xc   :  { %p231_p6 = por %p230_p5, %p229_p4 }
   0xe   :  { %p232_p7 = pnand %p231_p6, %p225_p3 }
  0x10   :  { %235 = shalt.err (!%p232_p7)
}
  0x11   :  { %s287_s22 = smov 128   ;;  %s288_s23 = smov 8  }
  0x12   :  { %22 = dma.hbm_to_vmem [thread:$0]  %s354_s0, 256, %s17_s13, [#allocation3], %s287_s22, %s287_s22, %s288_s23  }
  0x13   :  { %s289_s26 = smov [#allocation5]   ;;  %s236_s30 = scalar_lea.hbm %s355_s1, 640 }
  0x14   :  { %s28_s27 = sshll.u32 %s289_s26, 4  ;;  %p237_p8 = scmp.ne.s32.totalorder %s355_s1, %s236_s30  ;;  %s29_s27 = int_to_ptr.vmem [resolvable:$true] %s28_s27 }
  0x15   :  { %p240_p9 = scmp.lt.u32.totalorder %s236_s30, %s355_s1 }
  0x17   :  { %p242_p10 = pnand %p240_p9, %p237_p8 }
  0x19   :  { %245 = shalt.err (!%p242_p10)
}
  0x1a   :  { %s246_s8 = scalar_lea.vmem %s29_s27, 640  ;;  %p251_p12 = scmp.lt.s32.totalorder %s29_s27, %s29_s27 }
  0x1b   :  { %p247_p11 = scmp.ne.s32.totalorder %s29_s27, %s246_s8  ;;  %p252_p13 = scmp.lt.s32.totalorder %s246_s8, %s246_s8 }
  0x1d   :  { %p253_p0 = por %p252_p13, %p251_p12 }
  0x1f   :  { %p254_p1 = pnand %p253_p0, %p247_p11 }
  0x21   :  { %257 = shalt.err (!%p254_p1)
}
  0x22   :  { %34 = dma.hbm_to_vmem [thread:$0]  %s355_s1, 640, %s29_s27, [#allocation6], %s287_s22, %s287_s22, %s288_s23  }
  0x23   :  { %280 = dma.done.wait [#allocation3], 256  }
  0x24   :  { %281 = vsyncadd [#allocation3], 4294967040 }
  0x25   :  { %282 = dma.done.wait [#allocation6], 640  }
  0x26   :  { %283 = vsyncadd [#allocation6], 4294966656  ;;  %vm57_vm0 = vcmask 326656   ;;  %v45_v0 = vld [vmem:[#allocation5] sm:$0xff]  ;;  %v46_v1 = vld [vmem:[#allocation5 + $0x8] sm:$0xff]  ;;  %s290_s11 = smov [#allocation7]  }
  0x27   :  { %v47_v2 = vld [vmem:[#allocation5 + $0x10] sm:$0xff]  ;;  %v199_v3 = vpack.c.bf16 %v46_v1, %v45_v0  ;;  %v48_v4 = vld [vmem:[#allocation5 + $0x18] sm:$0xff]  ;;  %v49_v7 = vld [vmem:[#allocation5 + $0x20] sm:$0xff]  ;;  %s154_s12 = sshll.u32 %s290_s11, 4  ;;  %s155_s12 = int_to_ptr.vmem [resolvable:$true] %s154_s12 }
  0x28   :  { %v43_v5 = vld [vmem:[#allocation2] sm:$0xff]  ;;  %v203_v6 = vpack.c.bf16 %v48_v4, %v47_v2  ;;  %v44_v8 = vld [vmem:[#allocation2 + $0x8] sm:$0xff]  ;;  %s258_s13 = scalar_lea.vmem %s155_s12, 128  ;;  %p263_p3 = scmp.lt.s32.totalorder %s155_s12, %s155_s12 }
  0x29   :  { %196 = vmatprep.mubr.msk.f32.mxu0 %vm57_vm0, %v43_v5  ;;  %200 = vmatprep.subr.bf16.mxu0 %v199_v3  ;;  %v167_v9 = vld [vmem:[%s356_s2] ss:$0 sm:$0xff]  ;;  %p259_p2 = scmp.ne.s32.totalorder %s155_s12, %s258_s13  ;;  %p264_p4 = scmp.lt.s32.totalorder %s258_s13, %s258_s13 }
  0x2a   :  { %202 = vmatpush3.bf16.msra.mxu0 %v199_v3 }
  0x2b   :  { %204 = vmatprep.subr.bf16.mxu0 %v203_v6  ;;  %p265_p5 = por %p264_p4, %p263_p3 }
  0x2d   :  { %p266_p6 = pnand %p265_p5, %p259_p2 }
  0x2e   :  { %206 = vmatpush3.bf16.msra.mxu0 %v203_v6 }
  0x2f   :  { %194 = vmatprep.subr.mxu0 %v49_v7 }
  0x32   :  { %195 = vmatpush3.msra.mxu0 %v49_v7 }
  0x33   :  { %197 = vmatmul.mubr.msk.f32.vlgmr.msra.gmra.mrb[0].mxu0 %vm57_vm0, %v44_v8 }
 0x106   :  { %v198_v10 = vpop.f32.mrb[0].mxu0 }
 0x107   :  { %v136_v11 = vadd.f32 %v198_v10, %v167_v9  ;;  %v130_v12 = vpop.f32.mrb[1].mxu0 }
 0x108   :  { %v131_v13 = vadd.f32 %v167_v9, %v130_v12 }
 0x10a   :  { %v177_v14 = vpack.c.bf16 %v136_v11, %v131_v13 }
 0x10c   :  { %178 = vst [vmem:[#allocation7] sm:$0xff] %v177_v14  }
 0x10d   :  { %269 = shalt.err (!%p266_p6)
}
 0x10e   :  { %s270_s2 = scalar_lea.hbm %s357_s3, 128 }
 0x10f   :  { %p271_p7 = scmp.ne.s32.totalorder %s357_s3, %s270_s2  ;;  %p274_p8 = scmp.lt.u32.totalorder %s270_s2, %s357_s3 }
 0x111   :  { %p276_p9 = pnand %p274_p8, %p271_p7 }
 0x113   :  { %279 = shalt.err (!%p276_p9)
}
 0x114   :  { %s291_s20 = smov 64   ;;  %s292_s21 = smov 4  }
 0x115   :  { %160 = dma.vmem_to_hbm [thread:$0]  %s155_s12, 128, %s357_s3, [#allocation4], %s291_s20, %s291_s20, %s292_s21  }
 0x116   :  { %284 = dma.done.wait [#allocation4], 128  }
 0x117   :  { %285 = vsyncadd [#allocation4], 4294967168 }
 0x118   :  { %164 = vsyncpa [#allocation3], 1 }
 0x119   :  { %165 = vsyncpa [#allocation6], 1 }
 0x11a   :  { %166 = vsyncpa [#allocation4], 1 }

</bundles_post_ra>
